<compile_context>
chip_gen: v6e
topology: v6e:2x2x1
jax: 0.10.0
libtpu: 0.0.40
codegen_flags: <defaults>
</compile_context>

<pallas_src>
import functools

import jax
import jax.numpy as jnp
from jax.experimental import pallas as pl
from jax.experimental.pallas import tpu as pltpu

# Small, module-consistent hyperparameters.
VOCAB = 50
EMBED_DIM = 32
SEQ_LEN = 16
FILTER_SIZES = (3, 4, 5)
NUM_FILTERS = (16, 16, 16)
NUM_CLASSES = 2
BATCH = 2

K_MAX = max(FILTER_SIZES)
K_MIN = min(FILTER_SIZES)
F_TOTAL = sum(NUM_FILTERS)
L_OUT = SEQ_LEN - K_MIN + 1        # uniform conv-output length (14)
L_PAD = L_OUT + K_MAX - 1          # zero-padded sequence length (18)
KD = K_MAX * EMBED_DIM             # im2col contraction dim (160, 8-aligned)


def cnn_kernel(ids_ref, emb_ref, cwb_ref, fwb_ref, out_ref):
    """Fused embedding-gather + conv1d(x3) + ReLU + max-pool-over-time + linear."""
    # --- 1. Embedding lookup as a one-hot MXU matmul (pad ids == -1 -> zero rows).
    ids = ids_ref[...]                                        # (B*L_PAD, 1) int32
    n = ids.shape[0]
    B = n // L_PAD
    vocab_iota = jax.lax.broadcasted_iota(jnp.int32, (n, VOCAB), 1)
    one_hot = (ids == vocab_iota).astype(jnp.float32)         # (B*L_PAD, VOCAB)
    x = jnp.dot(one_hot, emb_ref[...],
                preferred_element_type=jnp.float32)           # (B*L_PAD, D)

    # --- 2. im2col (static 2D slices, B and K_MAX tiny) -> ONE conv matmul.
    cols = jnp.concatenate(
        [jnp.concatenate(
            [x[b * L_PAD + k: b * L_PAD + k + L_OUT, :] for k in range(K_MAX)],
            axis=1)
         for b in range(B)], axis=0)                          # (B*L_OUT, K_MAX*D)

    cwb = cwb_ref[...]                                        # (KD + 1, F_TOTAL)
    acc = jnp.dot(cols, cwb[:KD, :],
                  preferred_element_type=jnp.float32) + cwb[KD:KD + 1, :]
    acc = jnp.maximum(acc, 0.0)                               # bias + ReLU, (B*L_OUT, F)

    # --- 3. Mask invalid trailing time positions per filter group, max-pool over time.
    #        (Masking to 0 after ReLU is safe because ReLU output is >= 0.)
    t_idx = jax.lax.broadcasted_iota(jnp.int32, (L_OUT, F_TOTAL), 0)
    f_idx = jax.lax.broadcasted_iota(jnp.int32, (L_OUT, F_TOTAL), 1)
    valid = None
    off = 0
    for K, F in zip(FILTER_SIZES, NUM_FILTERS):
        cond = (f_idx >= off) & (f_idx < off + F) & (t_idx < SEQ_LEN - K + 1)
        valid = cond if valid is None else (valid | cond)
        off += F

    feats = jnp.concatenate(
        [jnp.max(jnp.where(valid, acc[b * L_OUT:(b + 1) * L_OUT, :], 0.0),
                 axis=0, keepdims=True)
         for b in range(B)], axis=0)                          # (B, F_TOTAL)

    # --- 4. Classifier (fc bias packed as the last row of the fc weight).
    fwb = fwb_ref[...]                                        # (F_TOTAL + 1, C)
    out_ref[...] = (jnp.dot(feats, fwb[:F_TOTAL, :],
                            preferred_element_type=jnp.float32)
                    + fwb[F_TOTAL:F_TOTAL + 1, :])            # (B, C)


def init_params(key):
    """Deterministic synthetic parameters (same shapes as the PyTorch module)."""
    keys = jax.random.split(key, 9)
    # Embedding table: row 0 zeroed (padding_idx=0). Values small enough that the
    # max_norm=5.0 renormalization in nn.Embedding is a no-op.
    emb = 0.1 * jax.random.normal(keys[0], (VOCAB, EMBED_DIM), jnp.float32)
    emb = emb.at[0].set(0.0)

    convs = []
    for i, (K, F) in enumerate(zip(FILTER_SIZES, NUM_FILTERS)):
        # PyTorch conv1d weight is (F, D, K); stored here as (K, D, F).
        w = 0.1 * jax.random.normal(keys[1 + 2 * i], (K, EMBED_DIM, F), jnp.float32)
        b = 0.1 * jax.random.normal(keys[2 + 2 * i], (1, F), jnp.float32)
        convs.extend([w, b])

    # PyTorch Linear weight is (C, total_f); stored transposed (total_f, C).
    fcw = 0.1 * jax.random.normal(keys[7], (F_TOTAL, NUM_CLASSES), jnp.float32)
    fcb = 0.1 * jax.random.normal(keys[8], (1, NUM_CLASSES), jnp.float32)
    return (emb, *convs, fcw, fcb)


def pack_params(params):
    """Host-side (one-time) packing into the kernel's fused layouts."""
    emb, w3, b3, w4, b4, w5, b5, fcw, fcb = params
    blocks = []
    for w in (w3, w4, w5):
        K, D, F = w.shape
        wk = jnp.zeros((K_MAX, D, F), jnp.float32).at[:K].set(w)   # zero-pad taps
        blocks.append(wk.reshape(K_MAX * D, F))                    # row index = k*D + d
    conv_w = jnp.concatenate(blocks, axis=1)                       # (KD, F_TOTAL)
    conv_b = jnp.concatenate([b3, b4, b5], axis=1)                 # (1, F_TOTAL)
    conv_wb = jnp.concatenate([conv_w, conv_b], axis=0)            # (KD+1, F_TOTAL)
    fc_wb = jnp.concatenate([fcw, fcb], axis=0)                    # (F_TOTAL+1, C)
    return emb, conv_wb, fc_wb


@jax.jit
def cnn_forward(input_ids, emb, conv_wb, fc_wb):
    B, L = input_ids.shape
    # Zero-length glue: pad token ids with -1 so pad positions embed to exactly zero
    # inside the kernel (independent of embedding row 0).
    ids_pad = jnp.full((B, L_PAD), -1, jnp.int32).at[:, :L].set(
        input_ids.astype(jnp.int32))
    ids_pad = ids_pad.reshape(B * L_PAD, 1)

    vmem = functools.partial(pl.BlockSpec, memory_space=pltpu.MemorySpace.VMEM)
    # Gridless single invocation: every operand is KB-scale and lives in VMEM.
    # TODO(synk): if BATCH is ever scaled up, add a batch grid axis with
    # dimension_semantics=("parallel",) so v7x's second TensorCore is used.
    return pl.pallas_call(
        cnn_kernel,
        out_shape=jax.ShapeDtypeStruct((B, NUM_CLASSES), jnp.float32),
        in_specs=[vmem() for _ in range(4)],
        out_specs=vmem(),
    )(ids_pad, emb, conv_wb, fc_wb)


def cnn_forward_ref(input_ids, params):
    """Pure-JAX reference mirroring the PyTorch forward (eval mode)."""
    emb, w3, b3, w4, b4, w5, b5, fcw, fcb = params
    x = emb[input_ids].astype(jnp.float32)            # (B, L, D)
    feats = []
    for w, b in ((w3, b3), (w4, b4), (w5, b5)):
        K = w.shape[0]
        l_out = x.shape[1] - K + 1
        acc = sum(jnp.einsum('bld,df->blf', x[:, k:k + l_out, :], w[k])
                  for k in range(K)) + b[None, :, :]
        feats.append(jnp.max(jax.nn.relu(acc), axis=1))
    feat = jnp.concatenate(feats, axis=1)
    # TODO(synk): dropout omitted — module default is training=False (eval).
    return feat @ fcw + fcb


if __name__ == "__main__":
    key = jax.random.PRNGKey(0)
    k_param, k_ids = jax.random.split(key)
    params = init_params(k_param)
    input_ids = jax.random.randint(k_ids, (BATCH, SEQ_LEN), 0, VOCAB,
                                   dtype=jnp.int32)

    emb, conv_wb, fc_wb = pack_params(params)         # packed once, host-side
    logits = cnn_forward(input_ids, emb, conv_wb, fc_wb)
    jax.block_until_ready(logits)

    ref = cnn_forward_ref(input_ids, params)
    assert logits.shape == (BATCH, NUM_CLASSES)
    assert jnp.allclose(logits, ref, atol=1e-4, rtol=1e-4), "mismatch vs reference"
    print("KERNEL_OK")
</pallas_src>

<mosaic_0001>
module attributes {stable_mosaic.version = 11 : i64} {
  func.func @cnn_kernel(%arg0: memref<36x1xi32, #tpu.memory_space<vmem>>, %arg1: memref<50x32xf32, #tpu.memory_space<vmem>>, %arg2: memref<161x48xf32, #tpu.memory_space<vmem>>, %arg3: memref<49x2xf32, #tpu.memory_space<vmem>>, %arg4: memref<2x2xf32, #tpu.memory_space<vmem>>) attributes {dimension_semantics = [], scalar_prefetch = 0 : i64, scratch_operands = 0 : i64, tpu.core_type = #tpu.core_type<tc>} {
    %c0 = arith.constant 0 : index
    %c0_0 = arith.constant 0 : index
    %0 = vector.load %arg0[%c0, %c0_0] : memref<36x1xi32, #tpu.memory_space<vmem>>, vector<36x1xi32>
    %1 = tpu.iota {dimensions = array<i32: 1>} : vector<36x50xi32>
    %2 = vector.broadcast %0 : vector<36x1xi32> to vector<36x50xi32>
    %3 = arith.cmpi eq, %2, %1 : vector<36x50xi32>
    %4 = arith.extui %3 : vector<36x50xi1> to vector<36x50xi32>
    %5 = arith.sitofp %4 : vector<36x50xi32> to vector<36x50xf32>
    %c0_1 = arith.constant 0 : index
    %c0_2 = arith.constant 0 : index
    %6 = vector.load %arg1[%c0_1, %c0_2] : memref<50x32xf32, #tpu.memory_space<vmem>>, vector<50x32xf32>
    %cst = arith.constant dense<0.000000e+00> : vector<36x32xf32>
    %7 = tpu.matmul %5, %6, %cst {dimension_numbers = #tpu.dot_dimension_numbers<[1], [0], [0], [1], [0, 0, 1, 1], [], []>} : vector<36x50xf32>, vector<50x32xf32>, vector<36x32xf32> -> vector<36x32xf32>
    %8 = vector.extract_strided_slice %7 {offsets = [0, 0], sizes = [14, 32], strides = [1, 1]} : vector<36x32xf32> to vector<14x32xf32>
    %9 = vector.extract_strided_slice %7 {offsets = [1, 0], sizes = [14, 32], strides = [1, 1]} : vector<36x32xf32> to vector<14x32xf32>
    %10 = vector.extract_strided_slice %7 {offsets = [2, 0], sizes = [14, 32], strides = [1, 1]} : vector<36x32xf32> to vector<14x32xf32>
    %11 = vector.extract_strided_slice %7 {offsets = [3, 0], sizes = [14, 32], strides = [1, 1]} : vector<36x32xf32> to vector<14x32xf32>
    %12 = vector.extract_strided_slice %7 {offsets = [4, 0], sizes = [14, 32], strides = [1, 1]} : vector<36x32xf32> to vector<14x32xf32>
    %13 = tpu.concatenate %8, %9, %10, %11, %12 in 1 : vector<14x32xf32>, vector<14x32xf32>, vector<14x32xf32>, vector<14x32xf32>, vector<14x32xf32> -> vector<14x160xf32>
    %14 = vector.extract_strided_slice %7 {offsets = [18, 0], sizes = [14, 32], strides = [1, 1]} : vector<36x32xf32> to vector<14x32xf32>
    %15 = vector.extract_strided_slice %7 {offsets = [19, 0], sizes = [14, 32], strides = [1, 1]} : vector<36x32xf32> to vector<14x32xf32>
    %16 = vector.extract_strided_slice %7 {offsets = [20, 0], sizes = [14, 32], strides = [1, 1]} : vector<36x32xf32> to vector<14x32xf32>
    %17 = vector.extract_strided_slice %7 {offsets = [21, 0], sizes = [14, 32], strides = [1, 1]} : vector<36x32xf32> to vector<14x32xf32>
    %18 = vector.extract_strided_slice %7 {offsets = [22, 0], sizes = [14, 32], strides = [1, 1]} : vector<36x32xf32> to vector<14x32xf32>
    %19 = tpu.concatenate %14, %15, %16, %17, %18 in 1 : vector<14x32xf32>, vector<14x32xf32>, vector<14x32xf32>, vector<14x32xf32>, vector<14x32xf32> -> vector<14x160xf32>
    %20 = tpu.concatenate %13, %19 in 0 : vector<14x160xf32>, vector<14x160xf32> -> vector<28x160xf32>
    %c0_3 = arith.constant 0 : index
    %c0_4 = arith.constant 0 : index
    %21 = vector.load %arg2[%c0_3, %c0_4] : memref<161x48xf32, #tpu.memory_space<vmem>>, vector<161x48xf32>
    %22 = vector.extract_strided_slice %21 {offsets = [0, 0], sizes = [160, 48], strides = [1, 1]} : vector<161x48xf32> to vector<160x48xf32>
    %cst_5 = arith.constant dense<0.000000e+00> : vector<28x48xf32>
    %23 = tpu.matmul %20, %22, %cst_5 {dimension_numbers = #tpu.dot_dimension_numbers<[1], [0], [0], [1], [0, 0, 1, 1], [], []>} : vector<28x160xf32>, vector<160x48xf32>, vector<28x48xf32> -> vector<28x48xf32>
    %24 = vector.extract_strided_slice %21 {offsets = [160, 0], sizes = [1, 48], strides = [1, 1]} : vector<161x48xf32> to vector<1x48xf32>
    %25 = vector.broadcast %24 : vector<1x48xf32> to vector<28x48xf32>
    %26 = arith.addf %23, %25 : vector<28x48xf32>
    %cst_6 = arith.constant 0.000000e+00 : f32
    %27 = vector.broadcast %cst_6 : f32 to vector<28x48xf32>
    %28 = arith.maximumf %26, %27 : vector<28x48xf32>
    %29 = tpu.iota {dimensions = array<i32: 0>} : vector<14x48xi32>
    %30 = tpu.iota {dimensions = array<i32: 1>} : vector<14x48xi32>
    %c0_i32 = arith.constant 0 : i32
    %31 = vector.broadcast %c0_i32 : i32 to vector<14x48xi32>
    %32 = arith.cmpi sge, %30, %31 : vector<14x48xi32>
    %c16_i32 = arith.constant 16 : i32
    %33 = vector.broadcast %c16_i32 : i32 to vector<14x48xi32>
    %34 = arith.cmpi slt, %30, %33 : vector<14x48xi32>
    %35 = arith.andi %32, %34 : vector<14x48xi1>
    %c14_i32 = arith.constant 14 : i32
    %36 = vector.broadcast %c14_i32 : i32 to vector<14x48xi32>
    %37 = arith.cmpi slt, %29, %36 : vector<14x48xi32>
    %38 = arith.andi %35, %37 : vector<14x48xi1>
    %c16_i32_7 = arith.constant 16 : i32
    %39 = vector.broadcast %c16_i32_7 : i32 to vector<14x48xi32>
    %40 = arith.cmpi sge, %30, %39 : vector<14x48xi32>
    %c32_i32 = arith.constant 32 : i32
    %41 = vector.broadcast %c32_i32 : i32 to vector<14x48xi32>
    %42 = arith.cmpi slt, %30, %41 : vector<14x48xi32>
    %43 = arith.andi %40, %42 : vector<14x48xi1>
    %c13_i32 = arith.constant 13 : i32
    %44 = vector.broadcast %c13_i32 : i32 to vector<14x48xi32>
    %45 = arith.cmpi slt, %29, %44 : vector<14x48xi32>
    %46 = arith.andi %43, %45 : vector<14x48xi1>
    %47 = arith.ori %38, %46 : vector<14x48xi1>
    %c32_i32_8 = arith.constant 32 : i32
    %48 = vector.broadcast %c32_i32_8 : i32 to vector<14x48xi32>
    %49 = arith.cmpi sge, %30, %48 : vector<14x48xi32>
    %c48_i32 = arith.constant 48 : i32
    %50 = vector.broadcast %c48_i32 : i32 to vector<14x48xi32>
    %51 = arith.cmpi slt, %30, %50 : vector<14x48xi32>
    %52 = arith.andi %49, %51 : vector<14x48xi1>
    %c12_i32 = arith.constant 12 : i32
    %53 = vector.broadcast %c12_i32 : i32 to vector<14x48xi32>
    %54 = arith.cmpi slt, %29, %53 : vector<14x48xi32>
    %55 = arith.andi %52, %54 : vector<14x48xi1>
    %56 = arith.ori %47, %55 : vector<14x48xi1>
    %57 = vector.extract_strided_slice %28 {offsets = [0, 0], sizes = [14, 48], strides = [1, 1]} : vector<28x48xf32> to vector<14x48xf32>
    %cst_9 = arith.constant 0.000000e+00 : f32
    %58 = vector.broadcast %cst_9 : f32 to vector<14x48xf32>
    %59 = arith.select %56, %57, %58 : vector<14x48xi1>, vector<14x48xf32>
    %cst_10 = arith.constant dense<0xFF800000> : vector<48xf32>
    %60 = vector.multi_reduction <maximumf>, %59, %cst_10 [0] : vector<14x48xf32> to vector<48xf32>
    %61 = vector.shape_cast %60 : vector<48xf32> to vector<1x48xf32>
    %62 = vector.extract_strided_slice %28 {offsets = [14, 0], sizes = [14, 48], strides = [1, 1]} : vector<28x48xf32> to vector<14x48xf32>
    %cst_11 = arith.constant 0.000000e+00 : f32
    %63 = vector.broadcast %cst_11 : f32 to vector<14x48xf32>
    %64 = arith.select %56, %62, %63 : vector<14x48xi1>, vector<14x48xf32>
    %cst_12 = arith.constant dense<0xFF800000> : vector<48xf32>
    %65 = vector.multi_reduction <maximumf>, %64, %cst_12 [0] : vector<14x48xf32> to vector<48xf32>
    %66 = vector.shape_cast %65 : vector<48xf32> to vector<1x48xf32>
    %67 = tpu.concatenate %61, %66 in 0 : vector<1x48xf32>, vector<1x48xf32> -> vector<2x48xf32>
    %c0_13 = arith.constant 0 : index
    %c0_14 = arith.constant 0 : index
    %68 = vector.load %arg3[%c0_13, %c0_14] : memref<49x2xf32, #tpu.memory_space<vmem>>, vector<49x2xf32>
    %69 = vector.extract_strided_slice %68 {offsets = [0, 0], sizes = [48, 2], strides = [1, 1]} : vector<49x2xf32> to vector<48x2xf32>
    %cst_15 = arith.constant dense<0.000000e+00> : vector<2x2xf32>
    %70 = tpu.matmul %67, %69, %cst_15 {dimension_numbers = #tpu.dot_dimension_numbers<[1], [0], [0], [1], [0, 0, 1, 1], [], []>} : vector<2x48xf32>, vector<48x2xf32>, vector<2x2xf32> -> vector<2x2xf32>
    %71 = vector.extract_strided_slice %68 {offsets = [48, 0], sizes = [1, 2], strides = [1, 1]} : vector<49x2xf32> to vector<1x2xf32>
    %72 = vector.broadcast %71 : vector<1x2xf32> to vector<2x2xf32>
    %73 = arith.addf %70, %72 : vector<2x2xf32>
    %c0_16 = arith.constant 0 : index
    %c0_17 = arith.constant 0 : index
    %74 = vector.load %arg4[%c0_16, %c0_17] : memref<2x2xf32, #tpu.memory_space<vmem>>, vector<2x2xf32>
    tpu.vector_store %arg4[%c0_16, %c0_17], %73 {strides = array<i32>} : memref<2x2xf32, #tpu.memory_space<vmem>>, vector<2x2xf32>,
    return
  }
}

</mosaic_0001>

<bundles_post_ra>
// kernel: cnn_forward.1
= control target key start
LH: loop header
LB: loop body
LE: loop exit
PB: predicated region body
PF: predicated region fallthrough
CT: control target
= control target key end

     0   :  { %v705_v2 = vmov 0   ;;  %vm78_vm0 = vcmask 1041408   ;;  %v706_v6 = vmov 0.0   ;;  %vm707_vm1 = vmmov 0   ;;  %s1035_s0 = inlined_call_operand.vmem [shape: s32[36,1], index: 0, kind: input, shape index: {}]   ;;  %s1036_s1 = inlined_call_operand.vmem [shape: f32[50,32], index: 1, kind: input, shape index: {}]   ;;  %s1037_s2 = inlined_call_operand.vmem [shape: f32[161,48], index: 2, kind: input, shape index: {}]   ;;  %s1038_s3 = inlined_call_operand.vmem [shape: f32[49,2], index: 3, kind: input, shape index: {}]   ;;  %s1039_s4 = inlined_call_operand.hbm [shape: f32[2,2], index: 4, kind: output, shape index: {}]  }
   0x1   :  { %v18_v0 = vld [vmem:[%s1035_s0] sm:$0xff]  ;;  %v20_v1 = vld [vmem:[%s1035_s0 + $0x10] sm:$0xff]  ;;  %656 = vset.pattern.permute.xlu0 %v705_v2  ;;  %657 = vset.pattern.permute.xlu1 %v705_v2  ;;  %v19_v4 = vld [vmem:[%s1035_s0 + $0x8] sm:$0xff] }
   0x2   :  { %v61_v3 = vld [vmem:[%s1036_s1 + $0x30] sm:$0x3]  ;;  %26 = vperm.xlu0 %656, %v18_v0   ;;  %32 = vperm.xlu1 %657, %v20_v1   ;;  %v21_v5 = vld [vmem:[%s1035_s0 + $0x18] sm:$0xff]  ;;  %v60_v7 = vld [vmem:[%s1036_s1 + $0x28] sm:$0xff] }
   0x3   :  { %605 = vmatprep.subr.mxu0 %v706_v6  ;;  %619 = vmatprep.mubr.msk.f32.mxu0 %vm707_vm1, %v706_v6 }
   0x4   :  { %606 = vmatpush3.msk.msra.mxu0 %vm78_vm0, %v61_v3  ;;  %315 = vmatprep.subr.mxu1 %v706_v6 }
   0x5   :  { %9 = vsyncpa [#allocation3], 0  ;;  %607 = vmatprep.subr.mxu0 %v706_v6  ;;  %v59_v8 = vld [vmem:[%s1036_s1 + $0x20] sm:$0xff]  ;;  %v58_v10 = vld [vmem:[%s1036_s1 + $0x18] sm:$0xff]  ;;  %v23_v14 = vlaneseq  ;;  %vm62_vm2 = vcmask 408576   ;;  %vm207_vm8 = vcmask 1043456  }
   0x6   :  { %29 = vperm.xlu0 %656, %v19_v4   ;;  %35 = vperm.xlu1 %657, %v21_v5   ;;  %v22_v9 = vld [vmem:[%s1035_s0 + $0x20] sm:$0xf]  ;;  %v57_v11 = vld [vmem:[%s1036_s1 + $0x10] sm:$0xff]  ;;  %v56_v12 = vld [vmem:[%s1036_s1 + $0x8] sm:$0xff]  ;;  %vm214_vm9 = vcmask 261120   ;;  %vm184_vm10 = vcmask 1045504  }
   0x7   :  { %608 = vmatpush3.msra.mxu0 %v60_v7  ;;  %v55_v13 = vld [vmem:[%s1036_s1] sm:$0xff]  ;;  %v786_v15 = vand.u32 127, %v23_v14  ;;  %v296_v26 = vld [vmem:[%s1037_s2 + $0x78] sm:$0xff]  ;;  %v295_v27 = vld [vmem:[%s1037_s2 + $0x70] sm:$0xff]  ;;  %vm174_vm11 = vcmask 1046528   ;;  %vm195_vm12 = vcmask 1044480  }
   0x8   :  { %609 = vmatprep.subr.mxu0 %v706_v6  ;;  %316 = vmatpush1.msra.mxu1 %v296_v26  ;;  %v294_v28 = vld [vmem:[%s1037_s2 + $0x68] sm:$0xff]  ;;  %v293_v29 = vld [vmem:[%s1037_s2 + $0x60] sm:$0xff]  ;;  %v292_v30 = vld [vmem:[%s1037_s2 + $0x58] sm:$0xff]  ;;  %s708_s23 = smov 64   ;;  %s709_s24 = smov 32   ;;  %vm217_vm13 = vcmask 523264  }
   0x9   :  { %610 = vmatpush3.msra.mxu0 %v59_v8  ;;  %317 = vmatprep.subr.mxu1 %v706_v6  ;;  %v291_v31 = vld [vmem:[%s1037_s2 + $0x50] sm:$0xff]  ;;  %v290_v32 = vld [vmem:[%s1037_s2 + $0x48] sm:$0xff]  ;;  %v289_v33 = vld [vmem:[%s1037_s2 + $0x40] sm:$0xff]  ;;  %s710_s25 = smov 96   ;;  %vm220_vm14 = vcmask 785408   ;;  %vm414_vm15 = vcmp.ge.s32.totalorder %v786_v15, 16 }
   0xa   :  { %38 = vperm.xlu0 %656, %v22_v9   ;;  %611 = vmatprep.subr.mxu0 %v706_v6  ;;  %v288_v34 = vld [vmem:[%s1037_s2 + $0x38] sm:$0xff]  ;;  %v287_v35 = vld [vmem:[%s1037_s2 + $0x30] sm:$0xff]  ;;  %v286_v36 = vld [vmem:[%s1037_s2 + $0x28] sm:$0xff]  ;;  %s711_s13 = smov [#allocation2]  }
   0xb   :  { %612 = vmatpush3.msra.mxu0 %v58_v10  ;;  %318 = vmatpush1.msra.mxu1 %v295_v27  ;;  %v285_v37 = vld [vmem:[%s1037_s2 + $0x20] sm:$0xff]  ;;  %v284_v38 = vld [vmem:[%s1037_s2 + $0x18] sm:$0xff]  ;;  %v283_v39 = vld [vmem:[%s1037_s2 + $0x10] sm:$0xff]  ;;  %s560_s14 = sshll.u32 %s711_s13, 4  ;;  %s561_s14 = int_to_ptr.vmem [resolvable:$true] %s560_s14 }
   0xc   :  { %613 = vmatprep.subr.mxu0 %v706_v6  ;;  %319 = vmatprep.subr.mxu1 %v706_v6  ;;  %v282_v40 = vld [vmem:[%s1037_s2 + $0x8] sm:$0xff]  ;;  %v281_v41 = vld [vmem:[%s1037_s2] sm:$0xff]  ;;  %v300_v45 = vld [vmem:[%s1037_s2 + $0x98] sm:$0xff]  ;;  %s683_s15 = scalar_lea.vmem %s561_s14, 32  ;;  %p688_p1 = scmp.lt.s32.totalorder %s561_s14, %s561_s14 }
   0xd   :  { %614 = vmatpush3.msra.mxu0 %v57_v11  ;;  %320 = vmatpush1.msra.mxu1 %v294_v28  ;;  %v299_v49 = vld [vmem:[%s1037_s2 + $0x90] sm:$0xff]  ;;  %v298_v52 = vld [vmem:[%s1037_s2 + $0x88] sm:$0xff]  ;;  %v297_v53 = vld [vmem:[%s1037_s2 + $0x80] sm:$0xff]  ;;  %p684_p0 = scmp.ne.s32.totalorder %s561_s14, %s683_s15  ;;  %p689_p2 = scmp.lt.s32.totalorder %s683_s15, %s683_s15 }
   0xe   :  { %615 = vmatprep.subr.mxu0 %v706_v6  ;;  %321 = vmatprep.subr.mxu1 %v706_v6 }
   0xf   :  { %616 = vmatpush3.msra.mxu0 %v56_v12  ;;  %322 = vmatpush1.msra.mxu1 %v293_v29  ;;  %p690_p3 = por %p689_p2, %p688_p1 }
  0x10   :  { %617 = vmatprep.subr.mxu0 %v706_v6  ;;  %323 = vmatprep.subr.mxu1 %v706_v6 }
  0x11   :  { %618 = vmatpush3.msra.mxu0 %v55_v13  ;;  %324 = vmatpush1.msra.mxu1 %v292_v30  ;;  %p691_p4 = pnand %p690_p3, %p684_p0 }
  0x12   :  { %634 = vmatprep.subr.mxu0 %v706_v6  ;;  %325 = vmatprep.subr.mxu1 %v706_v6 }
  0x13   :  { %326 = vmatpush1.msra.mxu1 %v291_v31 }
  0x14   :  { %327 = vmatprep.subr.mxu1 %v706_v6 }
  0x15   :  { %328 = vmatpush1.msra.mxu1 %v290_v32 }
  0x16   :  { %329 = vmatprep.subr.mxu1 %v706_v6 }
  0x17   :  { %330 = vmatpush1.msra.mxu1 %v289_v33 }
  0x18   :  { %331 = vmatprep.subr.mxu1 %v706_v6 }
  0x19   :  { %332 = vmatpush1.msra.mxu1 %v288_v34 }
  0x1a   :  { %333 = vmatprep.subr.mxu1 %v706_v6 }
  0x1b   :  { %334 = vmatpush1.msra.mxu1 %v287_v35 }
  0x1c   :  { %335 = vmatprep.subr.mxu1 %v706_v6 }
  0x1d   :  { %336 = vmatpush1.msra.mxu1 %v286_v36 }
  0x1e   :  { %337 = vmatprep.subr.mxu1 %v706_v6 }
  0x1f   :  { %338 = vmatpush1.msra.mxu1 %v285_v37 }
  0x20   :  { %339 = vmatprep.subr.mxu1 %v706_v6 }
  0x21   :  { %340 = vmatpush1.msra.mxu1 %v284_v38 }
  0x22   :  { %341 = vmatprep.subr.mxu1 %v706_v6 }
  0x23   :  { %342 = vmatpush1.msra.mxu1 %v283_v39 }
  0x24   :  { %343 = vmatprep.subr.mxu1 %v706_v6 }
  0x25   :  { %344 = vmatpush1.msra.mxu1 %v282_v40 }
  0x26   :  { %345 = vmatprep.subr.mxu1 %v706_v6 }
  0x27   :  { %346 = vmatpush1.msra.mxu1 %v281_v41 }
  0x28   :  { %371 = vmatprep.subr.mxu1 %v706_v6 }
  0x29   :  { %372 = vmatpush2.msra.mxu1 %v300_v45 }
  0x2a   :  { %373 = vmatprep.subr.mxu1 %v706_v6 }
  0x2b   :  { %374 = vmatpush2.msra.mxu1 %v299_v49 }
  0x2c   :  { %375 = vmatprep.subr.mxu1 %v706_v6 }
  0x2d   :  { %376 = vmatpush2.msra.mxu1 %v298_v52 }
  0x2e   :  { %377 = vmatprep.subr.mxu1 %v706_v6 }
  0x2f   :  { %378 = vmatpush2.msra.mxu1 %v297_v53 }
  0x7d   :  { %v27_v16 = vpop.permute.xlu0 %26  ;;  %v33_v18 = vpop.permute.xlu1 %32 }
  0x7e   :  { %vm40_vm3 = vcmp.eq.s32.totalorder %v27_v16, %v786_v15  ;;  %vm42_vm4 = vcmp.eq.s32.totalorder %v33_v18, %v786_v15 }
  0x7f   :  { %v568_v17 = vsel %vm40_vm3, 1.0, %v706_v6  ;;  %v570_v21 = vsel %vm42_vm4, 1.0, %v706_v6  ;;  %vm408_vm4 = vcmp.lt.s32.totalorder %v786_v15, 16 }
  0x80   :  { %620 = vmatmul.mubr.msk.f32.vlgmr.msra.gmra.mxu0 %vm62_vm2, %v568_v17 }
  0x81   :  { %v30_v19 = vpop.permute.xlu0 %29  ;;  %622 = vmatprep.mubr.msk.f32.mxu0 %vm707_vm1, %v706_v6  ;;  %v36_v22 = vpop.permute.xlu1 %35 }
  0x82   :  { %vm41_vm5 = vcmp.eq.s32.totalorder %v30_v19, %v786_v15  ;;  %vm43_vm6 = vcmp.eq.s32.totalorder %v36_v22, %v786_v15 }
  0x83   :  { %v569_v20 = vsel %vm41_vm5, 1.0, %v706_v6  ;;  %v571_v24 = vsel %vm43_vm6, 1.0, %v706_v6  ;;  %vm423_vm6 = vcmp.ge.s32.totalorder %v786_v15, 32 }
  0x84   :  { %623 = vmatmul.mubr.msk.f32.gmra.mxu0 %vm62_vm2, %v569_v20 }
  0x85   :  { %625 = vmatprep.mubr.msk.f32.mxu0 %vm707_vm1, %v706_v6  ;;  %v39_v23 = vpop.permute.xlu0 %38 }
  0x86   :  { %vm44_vm7 = vcmp.eq.s32.totalorder %v39_v23, %v786_v15 }
  0x87   :  { %v572_v25 = vsel %vm44_vm7, 1.0, %v706_v6  ;;  %vm424_vm7 = vcmp.lt.s32.totalorder %v786_v15, 48 }
  0x88   :  { %626 = vmatmul.mubr.msk.f32.gmra.mxu0 %vm62_vm2, %v570_v21 }
  0x89   :  { %628 = vmatprep.mubr.msk.f32.mxu0 %vm707_vm1, %v706_v6 }
  0x8c   :  { %629 = vmatmul.mubr.msk.f32.gmra.mxu0 %vm62_vm2, %v571_v24 }
  0x8d   :  { %631 = vmatprep.mubr.msk.f32.mxu0 %vm707_vm1, %v706_v6 }
  0x90   :  { %632 = vmatmul.mubr.msk.f32.gmra.mxu0 %vm62_vm2, %v572_v25 }
  0x91   :  { %646 = vmatprep.mubr.msk.f32.mxu0 %vm707_vm1, %v706_v6  ;;  %vm415_vm1 = vcmp.lt.s32.totalorder %v786_v15, 32 }
  0x92   :  { %vm416_vm5 = vmand %vm414_vm15, %vm415_vm1 }
 0x140   :  { %v877_v42 = vpop.f32.mrf.mxu0 }
 0x141   :  { %v208_v46 = vrot.slane %v877_v42, 4  ;;  %v175_v57 = vrot.slane %v877_v42, 1  ;;  %v185_v58 = vrot.slane %v877_v42, 2  ;;  %v196_v12 = vrot.slane %v877_v42, 3 }
 0x142   :  { %v621_v43 = vpop.f32.mrf.mxu0 }
 0x144   :  { %v879_v44 = vpop.f32.mrf.mxu0 }
 0x145   :  { %v209_v47 = vrot.slane %v879_v44, 4  ;;  %v186_v54 = vrot.slane %v879_v44, 2  ;;  %v176_v56 = vrot.slane %v879_v44, 1  ;;  %v197_v1 = vrot.slane %v879_v44, 3 }
 0x146   :  { %v624_v48 = vpop.f32.mrf.mxu0 }
 0x147   :  { %v210_v50 = vsel %vm207_vm8, %v208_v46, %v209_v47  ;;  %v187_v3 = vsel %vm184_vm10, %v185_v58, %v186_v54  ;;  %v177_v7 = vsel %vm174_vm11, %v175_v57, %v176_v56  ;;  %v198_v19 = vsel %vm195_vm12, %v196_v12, %v197_v1  ;;  %v469_v12 = vld [vmem:[%s1038_s3 + $0x8] sm:$0xff] }
 0x148   :  { %v893_v51 = vpop.f32.mrf.mxu0  ;;  %580 = vmatprep.mubr.msk.f32.mxu1 %vm214_vm9, %v210_v50 }
 0x149   :  { %v225_v59 = vrot.slane %v893_v51, 1  ;;  %v236_v61 = vrot.slane %v893_v51, 2  ;;  %v199_v4 = vrot.slane %v893_v51, 3  ;;  %v211_v29 = vrot.slane %v893_v51, 4 }
 0x14a   :  { %v627_v55 = vpop.f32.mrf.mxu0 }
 0x14b   :  { %v200_v26 = vsel %vm195_vm12, %v197_v1, %v199_v4 }
 0x14c   :  { %v909_v60 = vpop.f32.mrf.mxu0 }
 0x14d   :  { %v226_v62 = vrot.slane %v909_v60, 1  ;;  %v237_v63 = vrot.slane %v909_v60, 2  ;;  %v247_v0 = vrot.slane %v909_v60, 3  ;;  %v257_v28 = vrot.slane %v909_v60, 4 }
 0x14e   :  { %v630_v2 = vpop.f32.mrf.mxu0 }
 0x14f   :  { %v238_v5 = vsel %vm184_vm10, %v236_v61, %v237_v63  ;;  %v227_v8 = vsel %vm174_vm11, %v225_v59, %v226_v62  ;;  %v248_v17 = vsel %vm195_vm12, %v199_v4, %v247_v0  ;;  %v258_v34 = vsel %vm207_vm8, %v211_v29, %v257_v28 }
 0x150   :  { %v168_v9 = vpop.f32.mrf.mxu0  ;;  %v663_v10 = vpack.i.bf16 %v238_v5, %v187_v3  ;;  %v658_v11 = vpack.i.bf16 %v227_v8, %v177_v7  ;;  %v668_v21 = vpack.i.bf16 %v248_v17, %v198_v19  ;;  %v270_v43 = vrot.slane %v258_v34, 4  ;;  %v473_v8 = vld [vmem:[%s1038_s3 + $0x28] sm:$0xff] }
 0x151   :  { %v228_v13 = vrot.slane %v168_v9, 1  ;;  %v239_v16 = vrot.slane %v168_v9, 2  ;;  %v249_v25 = vrot.slane %v168_v9, 3  ;;  %v259_v36 = vrot.slane %v168_v9, 4  ;;  %635 = vmatpush3.msra.mxu0 %v473_v8  ;;  %v472_v9 = vld [vmem:[%s1038_s3 + $0x20] sm:$0xff] }
 0x152   :  { %664 = vrot.lane.b32.xlu0 %v663_v10, %s708_s23  ;;  %659 = vrot.lane.b32.xlu1 %v658_v11, %s709_s24  ;;  %v633_v18 = vpop.f32.mrf.mxu0  ;;  %v471_v10 = vld [vmem:[%s1038_s3 + $0x18] sm:$0xff]  ;;  %v470_v11 = vld [vmem:[%s1038_s3 + $0x10] sm:$0xff] }
 0x153   :  { %v229_v20 = vsel %vm174_vm11, %v226_v62, %v228_v13  ;;  %v240_v23 = vsel %vm184_vm10, %v237_v63, %v239_v16  ;;  %v250_v27 = vsel %vm195_vm12, %v247_v0, %v249_v25  ;;  %636 = vmatprep.subr.mxu0 %v706_v6  ;;  %v468_v13 = vld [vmem:[%s1038_s3] sm:$0xff]  ;;  %v405_v16 = vshrl.u32 %v23_v14, 7  ;;  %vm994_vm12 = vmand %vm423_vm6, %vm424_vm7 }
 0x154   :  { %v673_v22 = vpack.i.bf16 %v229_v20, %v176_v56  ;;  %v678_v24 = vpack.i.bf16 %v240_v23, %v186_v54  ;;  %637 = vmatpush3.msra.mxu0 %v472_v9  ;;  %v579_v18 = vld [vmem:[%s1037_s2 + $0xa0] ss:$0 sm:$0xff] }
 0x155   :  { %638 = vmatprep.subr.mxu0 %v706_v6  ;;  %v406_v17 = vadd.s32 8, %v405_v16 }
 0x156   :  { %669 = vrot.lane.b32.xlu1 %v668_v21, %s710_s25  ;;  %674 = vrot.lane.b32.xlu0 %v673_v22, %s709_s24 }
 0x157   :  { %639 = vmatpush3.msra.mxu0 %v471_v10  ;;  %vm411_vm2 = vcmp.lt.s32.totalorder %v406_v17, 14  ;;  %vm418_vm3 = vcmp.lt.s32.totalorder %v406_v17, 13  ;;  %vm427_vm11 = vcmp.lt.s32.totalorder %v406_v17, 12 }
 0x158   :  { %640 = vmatprep.subr.mxu0 %v706_v6 }
 0x159   :  { %641 = vmatpush3.msra.mxu0 %v470_v11 }
 0x15a   :  { %679 = vrot.lane.b32.xlu1 %v678_v24, %s708_s23  ;;  %203 = vrot.lane.b32.xlu0 %v200_v26, %s710_s25 }
 0x15b   :  { %642 = vmatprep.subr.mxu0 %v706_v6 }
 0x15c   :  { %643 = vmatpush3.msra.mxu0 %v469_v12 }
 0x15d   :  { %644 = vmatprep.subr.mxu0 %v706_v6 }
 0x15e   :  { %253 = vrot.lane.b32.xlu1 %v250_v27, %s710_s25  ;;  %645 = vmatpush3.msra.mxu0 %v468_v13 }
 0x1c4   :  { %v660_v30 = vpop.permute.xlu1 %659  ;;  %v665_v31 = vpop.permute.xlu0 %664 }
 0x1c5   :  { %v662_v32 = vunpack.i.h.bf16 %v660_v30  ;;  %v661_v33 = vunpack.i.l.bf16 %v660_v30  ;;  %v666_v35 = vunpack.i.l.bf16 %v665_v31  ;;  %v667_v37 = vunpack.i.h.bf16 %v665_v31 }
 0x1c7   :  { %v215_v38 = vsel %vm214_vm9, %v877_v42, %v661_v33  ;;  %v261_v39 = vsel %vm214_vm9, %v893_v51, %v662_v32  ;;  %v212_v42 = vsel %vm207_vm8, %v209_v47, %v211_v29  ;;  %v260_v51 = vsel %vm207_vm8, %v257_v28, %v259_v36 }
 0x1c8   :  { %v670_v40 = vpop.permute.xlu1 %669  ;;  %v675_v41 = vpop.permute.xlu0 %674  ;;  %v218_v50 = vsel %vm217_vm13, %v215_v38, %v666_v35  ;;  %v263_v52 = vsel %vm217_vm13, %v261_v39, %v667_v37  ;;  %v280_v55 = vsel %vm184_vm10, %v212_v42, %v270_v43  ;;  %v273_v62 = vrot.slane %v260_v51, 4 }
 0x1c9   :  { %v672_v45 = vunpack.i.h.bf16 %v670_v40  ;;  %v671_v46 = vunpack.i.l.bf16 %v670_v40  ;;  %v677_v48 = vunpack.i.h.bf16 %v675_v41  ;;  %v676_v49 = vunpack.i.l.bf16 %v675_v41 }
 0x1cb   :  { %v221_v53 = vsel %vm220_vm14, %v218_v50, %v671_v46  ;;  %v265_v56 = vsel %vm220_vm14, %v263_v52, %v672_v45  ;;  %v216_v59 = vsel %vm214_vm9, %v879_v44, %v676_v49  ;;  %v262_v61 = vsel %vm214_vm9, %v909_v60, %v677_v48 }
 0x1cc   :  { %v680_v54 = vpop.permute.xlu1 %679  ;;  %380 = vmatmul.mubr.f32.vlgmr.msra.gmra.mxu1 %v221_v53  ;;  %v204_v47 = vpop.permute.xlu0 %203  ;;  %v269_v1 = vrot.slane %v265_v56, 4  ;;  %v274_v44 = vsel %vm207_vm8, %v270_v43, %v273_v62 }
 0x1cd   :  { %v682_v57 = vunpack.i.h.bf16 %v680_v54  ;;  %v681_v58 = vunpack.i.l.bf16 %v680_v54  ;;  %581 = vmatprep.mubr.msk.f32.mxu1 %vm214_vm9, %v280_v55 }
 0x1cf   :  { %v219_v63 = vsel %vm217_vm13, %v216_v59, %v681_v58  ;;  %v264_v0 = vsel %vm217_vm13, %v262_v61, %v682_v57 }
 0x1d0   :  { %v222_v2 = vsel %vm220_vm14, %v219_v63, %v204_v47  ;;  %v254_v3 = vpop.permute.xlu1 %253 }
 0x1d1   :  { %v266_v4 = vsel %vm220_vm14, %v264_v0, %v254_v3  ;;  %v279_v5 = vsel %vm184_vm10, %v222_v2, %v269_v1  ;;  %vm990_vm10 = vmor %vm408_vm4, %vm416_vm5 }
 0x1d2   :  { %v271_v7 = vrot.slane %v266_v4, 4  ;;  %385 = vmatmul.mubr.f32.gmra.mxu1 %v279_v5  ;;  %vm429_vm14 = vmand %vm994_vm12, %vm427_vm11 }
 0x1d3   :  { %582 = vmatprep.mubr.msk.f32.mxu1 %vm214_vm9, %v274_v44  ;;  %vm430_vm15 = vmor %vm990_vm10, %vm994_vm12 }
 0x1d4   :  { %v272_v60 = vsel %vm207_vm8, %v269_v1, %v271_v7  ;;  %vm413_vm8 = vmand %vm408_vm4, %vm411_vm2  ;;  %vm434_vm2 = vcmask 392192   ;;  %vm466_vm4 = vcmask 1040384   ;;  %v584_v1 = vld [vmem:[%s1038_s3 + $0x30] ss:$0 sm:$0xff] }
 0x1d6   :  { %390 = vmatmul.mubr.f32.gmra.mxu1 %v272_v60 }
 0x1d7   :  { %583 = vmatprep.mubr.msk.f32.mxu1 %vm214_vm9, %v273_v62  ;;  %vm420_vm9 = vmand %vm416_vm5, %vm418_vm3  ;;  %vm436_vm3 = vcmask 390144  }
 0x1d8   :  { %vm422_vm13 = vmor %vm413_vm8, %vm420_vm9 }
 0x1d9   :  { %vm1004_vm1 = vmor %vm422_vm13, %vm429_vm14 }
 0x1da   :  { %395 = vmatmul.mubr.f32.gmra.mxu1 %v271_v7 }
 0x28c   :  { %v381_v19 = vpop.f32.mrf.mxu1 }
 0x28d   :  { %v382_v6 = vadd.f32 %v579_v18, %v381_v19 }
 0x28e   :  { %v383_v20 = vpop.f32.mrf.mxu1 }
 0x28f   :  { %v400_v22 = vmax.f32 %v382_v6, 0.0 }
 0x291   :  { %v432_v26 = vsel %vm430_vm15, %v400_v22, 0.0 }
 0x292   :  { %v386_v15 = vpop.f32.mrf.mxu1  ;;  %v435_v31 = vsel %vm434_vm2, %v432_v26, -inf }
 0x293   :  { %v387_v23 = vadd.f32 %v579_v18, %v386_v15 }
 0x294   :  { %v388_v25 = vpop.f32.mrf.mxu1 }
 0x295   :  { %v401_v27 = vmax.f32 %v387_v23, 0.0 }
 0x296   :  { %v391_v28 = vpop.f32.mrf.mxu1 }
 0x297   :  { %v433_v29 = vsel %vm1004_vm1, %v401_v27, 0.0  ;;  %v392_v30 = vadd.f32 %v579_v18, %v391_v28  ;;  %v448_v37 = vrot.slane %v401_v27, 6 }
 0x298   :  { %v437_v32 = vsel %vm436_vm3, %v433_v29, -inf  ;;  %v393_v33 = vpop.f32.mrf.mxu1 }
 0x299   :  { %v438_v34 = vmax.f32 %v435_v31, %v437_v32  ;;  %v402_v35 = vmax.f32 %v392_v30, 0.0 }
 0x29a   :  { %v396_v36 = vpop.f32.mrf.mxu1 }
 0x29b   :  { %v449_v38 = vrot.slane %v402_v35, 6  ;;  %v397_v39 = vadd.f32 %v579_v18, %v396_v36  ;;  %v439_v40 = vrot.slane %v438_v34, 4 }
 0x29c   :  { %v398_v41 = vpop.f32.mrf.mxu1 }
 0x29d   :  { %v450_v43 = vsel %vm78_vm0, %v448_v37, %v449_v38  ;;  %v403_v45 = vmax.f32 %v397_v39, 0.0  ;;  %v440_v48 = vmax.f32 %v438_v34, %v439_v40 }
 0x29e   :  { %v455_v49 = vsel %vm430_vm15, %v450_v43, 0.0 }
 0x29f   :  { %v451_v46 = vrot.slane %v403_v45, 6  ;;  %v457_v53 = vsel %vm434_vm2, %v455_v49, -inf  ;;  %v441_v51 = vrot.slane %v440_v48, 2 }
 0x2a1   :  { %v452_v50 = vsel %vm78_vm0, %v449_v38, %v451_v46  ;;  %v442_v56 = vmax.f32 %v440_v48, %v441_v51  ;;  %vm552_vm0 = vcmask 9216  }
 0x2a2   :  { %v456_v52 = vsel %vm1004_vm1, %v452_v50, 0.0 }
 0x2a3   :  { %v458_v42 = vsel %vm436_vm3, %v456_v52, -inf  ;;  %v443_v59 = vrot.slane %v442_v56, 1 }
 0x2a4   :  { %v459_v54 = vmax.f32 %v457_v53, %v458_v42 }
 0x2a5   :  { %v444_v47 = vmax.f32 %v442_v56, %v443_v59 }
 0x2a6   :  { %v460_v55 = vrot.slane %v459_v54, 4 }
 0x2a8   :  { %v461_v57 = vmax.f32 %v459_v54, %v460_v55 }
 0x2aa   :  { %v462_v58 = vrot.slane %v461_v57, 2 }
 0x2ac   :  { %v463_v61 = vmax.f32 %v461_v57, %v462_v58 }
 0x2ae   :  { %v464_v62 = vrot.slane %v463_v61, 1 }
 0x2b0   :  { %v465_v63 = vmax.f32 %v463_v61, %v464_v62 }
 0x2b2   :  { %v467_v0 = vsel %vm466_vm4, %v444_v47, %v465_v63 }
 0x2b3   :  { %647 = vmatmul.mubr.msk.f32.vlgmr.msra.gmra.mxu0 %vm434_vm2, %v467_v0 }
 0x373   :  { %v548_v2 = vpop.f32.mrf.mxu0 }
 0x374   :  { %v549_v3 = vadd.f32 %v584_v1, %v548_v2 }
 0x375   :  { %v648_v4 = vpop.f32.mrf.mxu0 }
 0x376   :  { %553 = vst.msk [vmem:[#allocation2] sm:$0x3] %vm552_vm0, %v549_v3 }
 0x377   :  { %694 = shalt.err (!%p691_p4)
}
 0x378   :  { %563 = dma.vmem_to_hbm [thread:$0]  %s561_s14, 32, %s1039_s4, [#allocation3]  }
 0x379   :  { %703 = dma.done.wait [#allocation3], 32  }
 0x37a   :  { %704 = vsyncadd [#allocation3], 4294967264 }
 0x37b   :  { %567 = vsyncpa [#allocation3], 1 }

</bundles_post_ra>
